<compile_context>
chip_gen: v6e
topology: v6e:2x2x1
jax: 0.10.0
libtpu: 0.0.40
codegen_flags: <defaults>
</compile_context>

<pallas_src>
import jax
import jax.numpy as jnp
from jax.experimental import pallas as pl
from jax.experimental.pallas import tpu as pltpu


# ---------------- Pallas kernel ----------------

def _make_fused_kernel(H, W, C):
    WC = W * C

    def kernel(xp_ref, t1_ref, b1_ref, t2_ref, b2_ref, ut_ref, ub_ref, bu_ref,
               o_ref, y1p_ref):
        # xp_ref : (1, H+2, WC)  bf16   row-padded input image (rows of W*C lanes)
        # t1_ref : (3, WC, WC)   bf16   conv1 banded weights, one band per dy tap
        # b1_ref : (1, WC)       f32
        # t2_ref : (3, WC, WC)   bf16   conv2 banded weights
        # b2_ref : (1, WC)       f32
        # ut_ref : (WC, 2*WC)    bf16   transpose-conv weights, output rows 2h   (kh=0)
        # ub_ref : (WC, 2*WC)    bf16   transpose-conv weights, output rows 2h+1 (kh=1)
        # bu_ref : (1, 2*WC)     f32
        # o_ref  : (1, 2, H, 2*WC) f32  out[0, kh, h, :] = output row 2h+kh (lane-dense)
        # y1p_ref: (H+2, WC)     f32    VMEM scratch: row-padded conv1 activation

        # ---- conv1 (3x3, SAME) + ReLU: 3 banded matmuls over the dy taps ----
        acc1 = jnp.dot(xp_ref[0, 0:H, :], t1_ref[0],
                       preferred_element_type=jnp.float32)
        acc1 = acc1 + jnp.dot(xp_ref[0, 1:H + 1, :], t1_ref[1],
                              preferred_element_type=jnp.float32)
        acc1 = acc1 + jnp.dot(xp_ref[0, 2:H + 2, :], t1_ref[2],
                              preferred_element_type=jnp.float32)
        y1 = jnp.maximum(acc1 + b1_ref[...], 0.0)          # (H, WC) f32

        # Stage conv1 activation in VMEM scratch with zero border rows (for conv2's dy taps).
        y1p_ref[0:1, :] = jnp.zeros((1, WC), jnp.float32)
        y1p_ref[H + 1:H + 2, :] = jnp.zeros((1, WC), jnp.float32)
        y1p_ref[1:H + 1, :] = y1

        # ---- conv2 (3x3, SAME) + ReLU ----
        acc2 = jnp.dot(y1p_ref[0:H, :].astype(jnp.bfloat16), t2_ref[0],
                       preferred_element_type=jnp.float32)
        acc2 = acc2 + jnp.dot(y1p_ref[1:H + 1, :].astype(jnp.bfloat16), t2_ref[1],
                              preferred_element_type=jnp.float32)
        acc2 = acc2 + jnp.dot(y1p_ref[2:H + 2, :].astype(jnp.bfloat16), t2_ref[2],
                              preferred_element_type=jnp.float32)
        y2 = jnp.maximum(acc2 + b2_ref[...], 0.0).astype(jnp.bfloat16)   # (H, WC)

        # ---- ConvTranspose2d(k=2, stride=2): block-diagonal matmul per output-row parity ----
        top = jnp.dot(y2, ut_ref[...], preferred_element_type=jnp.float32) + bu_ref[...]
        bot = jnp.dot(y2, ub_ref[...], preferred_element_type=jnp.float32) + bu_ref[...]
        o_ref[0, 0] = top.astype(o_ref.dtype)   # output rows 2h
        o_ref[0, 1] = bot.astype(o_ref.dtype)   # output rows 2h+1

    return kernel


# ---------------- weight re-packing (plain JAX, runs once per call) ----------------

def _banded_conv_weights(w, W):
    """(Cout, Cin, 3, 3) PyTorch conv weight -> (3, W*Cin, W*Cout) block-Toeplitz bands.

    T[dy][wi*Cin+ci, wo*Cout+co] = w[co, ci, dy, dx] where wi = wo + dx - 1 (zero outside),
    so  conv_out[h, wo, co] = sum_dy  x_rowpad[h+dy, :] @ T[dy]  implements SAME 3x3 conv.
    """
    Cout, Cin = w.shape[0], w.shape[1]
    k = jnp.transpose(w, (2, 3, 1, 0)).astype(jnp.float32)   # (dy, dx, ci, co)
    bands = []
    for dy in range(3):
        t = jnp.zeros((W, Cin, W, Cout), jnp.float32)
        for dx in range(3):
            band = jnp.eye(W, W, 1 - dx, dtype=jnp.float32)  # band[wi, wo]=1 iff wi==wo+dx-1
            t = t + band[:, None, :, None] * k[dy, dx][None, :, None, :]
        bands.append(t.reshape(W * Cin, W * Cout))
    return jnp.stack(bands, axis=0)


def _blockdiag_up_weights(wt, W):
    """(Cin, Cout, 2, 2) PyTorch ConvTranspose2d weight -> two (W*Cin, 2*W*Cout) block-diagonals.

    U_kh[wi*Cin+ci, wo*2*Cout + kw*Cout + co] = wt[ci, co, kh, kw] * (wi == wo), so
    out_row(2h+kh)[wo*2*Cout + kw*Cout + co] = (y[h] @ U_kh)[...] + b[co]  (k=2, stride=2).
    """
    Cin, Cout = wt.shape[0], wt.shape[1]
    eye = jnp.eye(W, dtype=jnp.float32)
    mats = []
    for kh in range(2):
        wk = jnp.transpose(wt[:, :, kh, :], (0, 2, 1)).astype(jnp.float32)  # (ci, kw, co)
        u = eye[:, None, :, None, None] * wk[None, :, None, :, :]           # (W,Cin,W,2,Cout)
        mats.append(u.reshape(W * Cin, W * 2 * Cout))
    return mats[0], mats[1]


# ---------------- wrapper ----------------

def unet_upsample_forward(x_nchw, params):
    """x_nchw: (N, C, H, W) float32 -> (N, C, 2H, 2W), matching Unet_upsample.forward."""
    w1, b1, w2, b2, wt, bt = params
    N, C, H, W = x_nchw.shape
    WC = W * C
    TWC = 2 * WC

    # NCHW -> (N, H+2, W*C): (w, c) flattened onto the lane axis, zero-padded rows for dy taps.
    x_rows = jnp.transpose(x_nchw, (0, 2, 3, 1)).reshape(N, H, WC)
    xp = jnp.pad(x_rows, ((0, 0), (1, 1), (0, 0))).astype(jnp.bfloat16)

    t1 = _banded_conv_weights(w1, W).astype(jnp.bfloat16)
    t2 = _banded_conv_weights(w2, W).astype(jnp.bfloat16)
    ut, ub = _blockdiag_up_weights(wt, W)
    ut = ut.astype(jnp.bfloat16)
    ub = ub.astype(jnp.bfloat16)
    b1r = jnp.tile(b1, W).reshape(1, WC).astype(jnp.float32)
    b2r = jnp.tile(b2, W).reshape(1, WC).astype(jnp.float32)
    btr = jnp.tile(bt, 2 * W).reshape(1, TWC).astype(jnp.float32)

    kernel = _make_fused_kernel(H, W, C)

    flops = N * (2 * 3 * 2 * H * WC * WC + 2 * 2 * H * WC * TWC)
    bytes_accessed = (
        xp.size * 2 + (t1.size + t2.size + ut.size + ub.size) * 2
        + (b1r.size + b2r.size + btr.size) * 4 + N * 2 * H * TWC * 4
    )

    # TODO(synk): for production UNet sizes (large W*C) add a grid over W and re-derive
    # tile sizes against v7x's 64 MiB VMEM; at these shapes everything fits trivially.
    out = pl.pallas_call(
        kernel,
        out_shape=jax.ShapeDtypeStruct((N, 2, H, TWC), jnp.float32),
        grid=(N,),
        in_specs=[
            pl.BlockSpec((1, H + 2, WC), lambda n: (n, 0, 0)),
            pl.BlockSpec((3, WC, WC), lambda n: (0, 0, 0)),
            pl.BlockSpec((1, WC), lambda n: (0, 0)),
            pl.BlockSpec((3, WC, WC), lambda n: (0, 0, 0)),
            pl.BlockSpec((1, WC), lambda n: (0, 0)),
            pl.BlockSpec((WC, TWC), lambda n: (0, 0)),
            pl.BlockSpec((WC, TWC), lambda n: (0, 0)),
            pl.BlockSpec((1, TWC), lambda n: (0, 0)),
        ],
        out_specs=pl.BlockSpec((1, 2, H, TWC), lambda n: (n, 0, 0, 0)),
        scratch_shapes=[pltpu.VMEM((H + 2, WC), jnp.float32)],
        compiler_params=pltpu.CompilerParams(dimension_semantics=("parallel",)),
        cost_estimate=pl.CostEstimate(flops=flops, transcendentals=0,
                                      bytes_accessed=bytes_accessed),
    )(xp, t1, b1r, t2, b2r, ut, ub, btr)

    # (N, 2, H, 2*W*C) -> (N, C, 2H, 2W): de-interleave the 2x2 transpose-conv phases.
    out = out.reshape(N, 2, H, W, 2, C)                 # (n, kh, h, w, kw, c)
    out = jnp.transpose(out, (0, 5, 2, 1, 3, 4))        # (n, c, h, kh, w, kw)
    return out.reshape(N, C, 2 * H, 2 * W)


# ---------------- reference (for verification) ----------------

def _reference(x_nchw, params):
    w1, b1, w2, b2, wt, bt = params

    def conv(x, w, b):
        y = jax.lax.conv_general_dilated(
            x, w, window_strides=(1, 1), padding="SAME",
            dimension_numbers=("NCHW", "OIHW", "NCHW"))
        return jax.nn.relu(y + b[None, :, None, None])

    y = conv(conv(x_nchw, w1, b1), w2, b2)
    N, C, H, W = y.shape
    # ConvTranspose2d(k=2, s=2): out[n, co, 2h+kh, 2w+kw] = sum_ci y[n,ci,h,w]*wt[ci,co,kh,kw] + bt[co]
    u = jnp.einsum('nihw,iokl->nohwkl', y, wt)
    u = jnp.transpose(u, (0, 1, 2, 4, 3, 5)).reshape(N, wt.shape[1], 2 * H, 2 * W)
    return u + bt[None, :, None, None]


# ---------------- main ----------------

if __name__ == "__main__":
    key = jax.random.PRNGKey(0)
    keys = jax.random.split(key, 7)

    N, C, H, W = 2, 4, 16, 16          # unet_in = 4
    x = jax.random.normal(keys[0], (N, C, H, W), dtype=jnp.float32)

    # Synthetic parameters in PyTorch layouts:
    #   Conv2d weight (Cout, Cin, 3, 3); ConvTranspose2d weight (Cin, Cout, 2, 2).
    w1 = 0.1 * jax.random.normal(keys[1], (C, C, 3, 3), dtype=jnp.float32)
    b1 = 0.1 * jax.random.normal(keys[2], (C,), dtype=jnp.float32)
    w2 = 0.1 * jax.random.normal(keys[3], (C, C, 3, 3), dtype=jnp.float32)
    b2 = 0.1 * jax.random.normal(keys[4], (C,), dtype=jnp.float32)
    wt = 0.1 * jax.random.normal(keys[5], (C, C, 2, 2), dtype=jnp.float32)
    bt = 0.1 * jax.random.normal(keys[6], (C,), dtype=jnp.float32)
    params = (w1, b1, w2, b2, wt, bt)

    out = jax.block_until_ready(unet_upsample_forward(x, params))
    ref = jax.block_until_ready(_reference(x, params))

    assert out.shape == (N, C, 2 * H, 2 * W), out.shape
    max_err = float(jnp.max(jnp.abs(out - ref)))
    # bf16 MXU operands with f32 accumulation -> slightly looser tolerance than pure f32.
    assert jnp.allclose(out, ref, atol=3e-2, rtol=3e-2), max_err

    print("KERNEL_OK")
</pallas_src>

<mosaic_0001>
module attributes {stable_mosaic.version = 11 : i64} {
  func.func @kernel(%arg0: i32, %arg1: memref<1x18x64xbf16, #tpu.memory_space<vmem>>, %arg2: memref<3x64x64xbf16, #tpu.memory_space<vmem>>, %arg3: memref<1x64xf32, #tpu.memory_space<vmem>>, %arg4: memref<3x64x64xbf16, #tpu.memory_space<vmem>>, %arg5: memref<1x64xf32, #tpu.memory_space<vmem>>, %arg6: memref<64x128xbf16, #tpu.memory_space<vmem>>, %arg7: memref<64x128xbf16, #tpu.memory_space<vmem>>, %arg8: memref<1x128xf32, #tpu.memory_space<vmem>>, %arg9: memref<1x2x16x128xf32, #tpu.memory_space<vmem>>, %arg10: memref<18x64xf32, #tpu.memory_space<vmem>>) attributes {dimension_semantics = [#tpu.dimension_semantics<parallel>], iteration_bounds = array<i64: 2>, scalar_prefetch = 0 : i64, scratch_operands = 1 : i64, tpu.core_type = #tpu.core_type<tc>, window_params = [{transform_indices = @transform_0, window_bounds = array<i64: 1, 18, 64>}, {pipeline_mode = #tpu.pipeline_mode<synchronous>, transform_indices = @transform_1, window_bounds = array<i64: 3, 64, 64>}, {pipeline_mode = #tpu.pipeline_mode<synchronous>, transform_indices = @transform_2, window_bounds = array<i64: 1, 64>}, {pipeline_mode = #tpu.pipeline_mode<synchronous>, transform_indices = @transform_3, window_bounds = array<i64: 3, 64, 64>}, {pipeline_mode = #tpu.pipeline_mode<synchronous>, transform_indices = @transform_4, window_bounds = array<i64: 1, 64>}, {pipeline_mode = #tpu.pipeline_mode<synchronous>, transform_indices = @transform_5, window_bounds = array<i64: 64, 128>}, {pipeline_mode = #tpu.pipeline_mode<synchronous>, transform_indices = @transform_6, window_bounds = array<i64: 64, 128>}, {pipeline_mode = #tpu.pipeline_mode<synchronous>, transform_indices = @transform_7, window_bounds = array<i64: 1, 128>}, {transform_indices = @transform_8, window_bounds = array<i64: 1, 2, 16, 128>}]} {
    %c0 = arith.constant 0 : index
    %c0_0 = arith.constant 0 : index
    %c0_1 = arith.constant 0 : index
    %0 = vector.load %arg1[%c0, %c0_0, %c0_1] : memref<1x18x64xbf16, #tpu.memory_space<vmem>>, vector<1x16x64xbf16>
    %1 = vector.shape_cast %0 : vector<1x16x64xbf16> to vector<16x64xbf16>
    %c0_2 = arith.constant 0 : index
    %c0_3 = arith.constant 0 : index
    %c0_4 = arith.constant 0 : index
    %2 = vector.load %arg2[%c0_2, %c0_3, %c0_4] : memref<3x64x64xbf16, #tpu.memory_space<vmem>>, vector<1x64x64xbf16>
    %3 = vector.shape_cast %2 : vector<1x64x64xbf16> to vector<64x64xbf16>
    %cst = arith.constant dense<0.000000e+00> : vector<16x64xf32>
    %4 = tpu.matmul %1, %3, %cst {dimension_numbers = #tpu.dot_dimension_numbers<[1], [0], [0], [1], [0, 0, 1, 1], [], []>} : vector<16x64xbf16>, vector<64x64xbf16>, vector<16x64xf32> -> vector<16x64xf32>
    %c0_5 = arith.constant 0 : index
    %c1 = arith.constant 1 : index
    %c0_6 = arith.constant 0 : index
    %5 = vector.load %arg1[%c0_5, %c1, %c0_6] : memref<1x18x64xbf16, #tpu.memory_space<vmem>>, vector<1x16x64xbf16>
    %6 = vector.shape_cast %5 : vector<1x16x64xbf16> to vector<16x64xbf16>
    %c1_7 = arith.constant 1 : index
    %c0_8 = arith.constant 0 : index
    %c0_9 = arith.constant 0 : index
    %7 = vector.load %arg2[%c1_7, %c0_8, %c0_9] : memref<3x64x64xbf16, #tpu.memory_space<vmem>>, vector<1x64x64xbf16>
    %8 = vector.shape_cast %7 : vector<1x64x64xbf16> to vector<64x64xbf16>
    %cst_10 = arith.constant dense<0.000000e+00> : vector<16x64xf32>
    %9 = tpu.matmul %6, %8, %cst_10 {dimension_numbers = #tpu.dot_dimension_numbers<[1], [0], [0], [1], [0, 0, 1, 1], [], []>} : vector<16x64xbf16>, vector<64x64xbf16>, vector<16x64xf32> -> vector<16x64xf32>
    %10 = arith.addf %4, %9 : vector<16x64xf32>
    %c0_11 = arith.constant 0 : index
    %c2 = arith.constant 2 : index
    %c0_12 = arith.constant 0 : index
    %11 = vector.load %arg1[%c0_11, %c2, %c0_12] : memref<1x18x64xbf16, #tpu.memory_space<vmem>>, vector<1x16x64xbf16>
    %12 = vector.shape_cast %11 : vector<1x16x64xbf16> to vector<16x64xbf16>
    %c2_13 = arith.constant 2 : index
    %c0_14 = arith.constant 0 : index
    %c0_15 = arith.constant 0 : index
    %13 = vector.load %arg2[%c2_13, %c0_14, %c0_15] : memref<3x64x64xbf16, #tpu.memory_space<vmem>>, vector<1x64x64xbf16>
    %14 = vector.shape_cast %13 : vector<1x64x64xbf16> to vector<64x64xbf16>
    %cst_16 = arith.constant dense<0.000000e+00> : vector<16x64xf32>
    %15 = tpu.matmul %12, %14, %cst_16 {dimension_numbers = #tpu.dot_dimension_numbers<[1], [0], [0], [1], [0, 0, 1, 1], [], []>} : vector<16x64xbf16>, vector<64x64xbf16>, vector<16x64xf32> -> vector<16x64xf32>
    %16 = arith.addf %10, %15 : vector<16x64xf32>
    %c0_17 = arith.constant 0 : index
    %c0_18 = arith.constant 0 : index
    %17 = vector.load %arg3[%c0_17, %c0_18] : memref<1x64xf32, #tpu.memory_space<vmem>>, vector<1x64xf32>
    %18 = vector.broadcast %17 : vector<1x64xf32> to vector<16x64xf32>
    %19 = arith.addf %16, %18 : vector<16x64xf32>
    %cst_19 = arith.constant 0.000000e+00 : f32
    %20 = vector.broadcast %cst_19 : f32 to vector<16x64xf32>
    %21 = arith.maximumf %19, %20 : vector<16x64xf32>
    %cst_20 = arith.constant 0.000000e+00 : f32
    %22 = vector.broadcast %cst_20 : f32 to vector<1x64xf32>
    %c0_21 = arith.constant 0 : index
    %c0_22 = arith.constant 0 : index
    %23 = vector.load %arg10[%c0_21, %c0_22] : memref<18x64xf32, #tpu.memory_space<vmem>>, vector<1x64xf32>
    tpu.vector_store %arg10[%c0_21, %c0_22], %22 {strides = array<i32>} : memref<18x64xf32, #tpu.memory_space<vmem>>, vector<1x64xf32>,
    %cst_23 = arith.constant 0.000000e+00 : f32
    %24 = vector.broadcast %cst_23 : f32 to vector<1x64xf32>
    %c17 = arith.constant 17 : index
    %c0_24 = arith.constant 0 : index
    %25 = vector.load %arg10[%c17, %c0_24] : memref<18x64xf32, #tpu.memory_space<vmem>>, vector<1x64xf32>
    tpu.vector_store %arg10[%c17, %c0_24], %24 {strides = array<i32>} : memref<18x64xf32, #tpu.memory_space<vmem>>, vector<1x64xf32>,
    %c1_25 = arith.constant 1 : index
    %c0_26 = arith.constant 0 : index
    %26 = vector.load %arg10[%c1_25, %c0_26] : memref<18x64xf32, #tpu.memory_space<vmem>>, vector<16x64xf32>
    tpu.vector_store %arg10[%c1_25, %c0_26], %21 {strides = array<i32>} : memref<18x64xf32, #tpu.memory_space<vmem>>, vector<16x64xf32>,
    %c0_27 = arith.constant 0 : index
    %c0_28 = arith.constant 0 : index
    %27 = vector.load %arg10[%c0_27, %c0_28] : memref<18x64xf32, #tpu.memory_space<vmem>>, vector<16x64xf32>
    %28 = arith.truncf %27 : vector<16x64xf32> to vector<16x64xbf16>
    %c0_29 = arith.constant 0 : index
    %c0_30 = arith.constant 0 : index
    %c0_31 = arith.constant 0 : index
    %29 = vector.load %arg4[%c0_29, %c0_30, %c0_31] : memref<3x64x64xbf16, #tpu.memory_space<vmem>>, vector<1x64x64xbf16>
    %30 = vector.shape_cast %29 : vector<1x64x64xbf16> to vector<64x64xbf16>
    %cst_32 = arith.constant dense<0.000000e+00> : vector<16x64xf32>
    %31 = tpu.matmul %28, %30, %cst_32 {dimension_numbers = #tpu.dot_dimension_numbers<[1], [0], [0], [1], [0, 0, 1, 1], [], []>} : vector<16x64xbf16>, vector<64x64xbf16>, vector<16x64xf32> -> vector<16x64xf32>
    %c1_33 = arith.constant 1 : index
    %c0_34 = arith.constant 0 : index
    %32 = vector.load %arg10[%c1_33, %c0_34] : memref<18x64xf32, #tpu.memory_space<vmem>>, vector<16x64xf32>
    %33 = arith.truncf %32 : vector<16x64xf32> to vector<16x64xbf16>
    %c1_35 = arith.constant 1 : index
    %c0_36 = arith.constant 0 : index
    %c0_37 = arith.constant 0 : index
    %34 = vector.load %arg4[%c1_35, %c0_36, %c0_37] : memref<3x64x64xbf16, #tpu.memory_space<vmem>>, vector<1x64x64xbf16>
    %35 = vector.shape_cast %34 : vector<1x64x64xbf16> to vector<64x64xbf16>
    %cst_38 = arith.constant dense<0.000000e+00> : vector<16x64xf32>
    %36 = tpu.matmul %33, %35, %cst_38 {dimension_numbers = #tpu.dot_dimension_numbers<[1], [0], [0], [1], [0, 0, 1, 1], [], []>} : vector<16x64xbf16>, vector<64x64xbf16>, vector<16x64xf32> -> vector<16x64xf32>
    %37 = arith.addf %31, %36 : vector<16x64xf32>
    %c2_39 = arith.constant 2 : index
    %c0_40 = arith.constant 0 : index
    %38 = vector.load %arg10[%c2_39, %c0_40] : memref<18x64xf32, #tpu.memory_space<vmem>>, vector<16x64xf32>
    %39 = arith.truncf %38 : vector<16x64xf32> to vector<16x64xbf16>
    %c2_41 = arith.constant 2 : index
    %c0_42 = arith.constant 0 : index
    %c0_43 = arith.constant 0 : index
    %40 = vector.load %arg4[%c2_41, %c0_42, %c0_43] : memref<3x64x64xbf16, #tpu.memory_space<vmem>>, vector<1x64x64xbf16>
    %41 = vector.shape_cast %40 : vector<1x64x64xbf16> to vector<64x64xbf16>
    %cst_44 = arith.constant dense<0.000000e+00> : vector<16x64xf32>
    %42 = tpu.matmul %39, %41, %cst_44 {dimension_numbers = #tpu.dot_dimension_numbers<[1], [0], [0], [1], [0, 0, 1, 1], [], []>} : vector<16x64xbf16>, vector<64x64xbf16>, vector<16x64xf32> -> vector<16x64xf32>
    %43 = arith.addf %37, %42 : vector<16x64xf32>
    %c0_45 = arith.constant 0 : index
    %c0_46 = arith.constant 0 : index
    %44 = vector.load %arg5[%c0_45, %c0_46] : memref<1x64xf32, #tpu.memory_space<vmem>>, vector<1x64xf32>
    %45 = vector.broadcast %44 : vector<1x64xf32> to vector<16x64xf32>
    %46 = arith.addf %43, %45 : vector<16x64xf32>
    %cst_47 = arith.constant 0.000000e+00 : f32
    %47 = vector.broadcast %cst_47 : f32 to vector<16x64xf32>
    %48 = arith.maximumf %46, %47 : vector<16x64xf32>
    %49 = arith.truncf %48 : vector<16x64xf32> to vector<16x64xbf16>
    %c0_48 = arith.constant 0 : index
    %c0_49 = arith.constant 0 : index
    %50 = vector.load %arg6[%c0_48, %c0_49] : memref<64x128xbf16, #tpu.memory_space<vmem>>, vector<64x128xbf16>
    %cst_50 = arith.constant dense<0.000000e+00> : vector<16x128xf32>
    %51 = tpu.matmul %49, %50, %cst_50 {dimension_numbers = #tpu.dot_dimension_numbers<[1], [0], [0], [1], [0, 0, 1, 1], [], []>} : vector<16x64xbf16>, vector<64x128xbf16>, vector<16x128xf32> -> vector<16x128xf32>
    %c0_51 = arith.constant 0 : index
    %c0_52 = arith.constant 0 : index
    %52 = vector.load %arg8[%c0_51, %c0_52] : memref<1x128xf32, #tpu.memory_space<vmem>>, vector<1x128xf32>
    %53 = vector.broadcast %52 : vector<1x128xf32> to vector<16x128xf32>
    %54 = arith.addf %51, %53 : vector<16x128xf32>
    %c0_53 = arith.constant 0 : index
    %c0_54 = arith.constant 0 : index
    %55 = vector.load %arg7[%c0_53, %c0_54] : memref<64x128xbf16, #tpu.memory_space<vmem>>, vector<64x128xbf16>
    %cst_55 = arith.constant dense<0.000000e+00> : vector<16x128xf32>
    %56 = tpu.matmul %49, %55, %cst_55 {dimension_numbers = #tpu.dot_dimension_numbers<[1], [0], [0], [1], [0, 0, 1, 1], [], []>} : vector<16x64xbf16>, vector<64x128xbf16>, vector<16x128xf32> -> vector<16x128xf32>
    %c0_56 = arith.constant 0 : index
    %c0_57 = arith.constant 0 : index
    %57 = vector.load %arg8[%c0_56, %c0_57] : memref<1x128xf32, #tpu.memory_space<vmem>>, vector<1x128xf32>
    %58 = vector.broadcast %57 : vector<1x128xf32> to vector<16x128xf32>
    %59 = arith.addf %56, %58 : vector<16x128xf32>
    %c0_58 = arith.constant 0 : index
    %c0_59 = arith.constant 0 : index
    %c0_60 = arith.constant 0 : index
    %c0_61 = arith.constant 0 : index
    %60 = vector.load %arg9[%c0_58, %c0_59, %c0_60, %c0_61] : memref<1x2x16x128xf32, #tpu.memory_space<vmem>>, vector<1x1x16x128xf32>
    %61 = vector.shape_cast %60 : vector<1x1x16x128xf32> to vector<16x128xf32>
    %62 = vector.shape_cast %54 : vector<16x128xf32> to vector<1x1x16x128xf32>
    tpu.vector_store %arg9[%c0_58, %c0_59, %c0_60, %c0_61], %62 {strides = array<i32>} : memref<1x2x16x128xf32, #tpu.memory_space<vmem>>, vector<1x1x16x128xf32>,
    %c0_62 = arith.constant 0 : index
    %c1_63 = arith.constant 1 : index
    %c0_64 = arith.constant 0 : index
    %c0_65 = arith.constant 0 : index
    %63 = vector.load %arg9[%c0_62, %c1_63, %c0_64, %c0_65] : memref<1x2x16x128xf32, #tpu.memory_space<vmem>>, vector<1x1x16x128xf32>
    %64 = vector.shape_cast %63 : vector<1x1x16x128xf32> to vector<16x128xf32>
    %65 = vector.shape_cast %59 : vector<16x128xf32> to vector<1x1x16x128xf32>
    tpu.vector_store %arg9[%c0_62, %c1_63, %c0_64, %c0_65], %65 {strides = array<i32>} : memref<1x2x16x128xf32, #tpu.memory_space<vmem>>, vector<1x1x16x128xf32>,
    return
  }
  func.func @transform_0(%arg0: i32) -> (i32, i32, i32) {
    %c0_i32 = arith.constant 0 : i32
    %c0_i32_0 = arith.constant 0 : i32
    %c0_i32_1 = arith.constant 0 : i32
    return %arg0, %c0_i32, %c0_i32_0 : i32, i32, i32
  }
  func.func @transform_1(%arg0: i32) -> (i32, i32, i32) {
    %c0_i32 = arith.constant 0 : i32
    %c0_i32_0 = arith.constant 0 : i32
    %c0_i32_1 = arith.constant 0 : i32
    %c0_i32_2 = arith.constant 0 : i32
    return %c0_i32, %c0_i32_0, %c0_i32_1 : i32, i32, i32
  }
  func.func @transform_2(%arg0: i32) -> (i32, i32) {
    %c0_i32 = arith.constant 0 : i32
    %c0_i32_0 = arith.constant 0 : i32
    %c0_i32_1 = arith.constant 0 : i32
    return %c0_i32, %c0_i32_0 : i32, i32
  }
  func.func @transform_3(%arg0: i32) -> (i32, i32, i32) {
    %c0_i32 = arith.constant 0 : i32
    %c0_i32_0 = arith.constant 0 : i32
    %c0_i32_1 = arith.constant 0 : i32
    %c0_i32_2 = arith.constant 0 : i32
    return %c0_i32, %c0_i32_0, %c0_i32_1 : i32, i32, i32
  }
  func.func @transform_4(%arg0: i32) -> (i32, i32) {
    %c0_i32 = arith.constant 0 : i32
    %c0_i32_0 = arith.constant 0 : i32
    %c0_i32_1 = arith.constant 0 : i32
    return %c0_i32, %c0_i32_0 : i32, i32
  }
  func.func @transform_5(%arg0: i32) -> (i32, i32) {
    %c0_i32 = arith.constant 0 : i32
    %c0_i32_0 = arith.constant 0 : i32
    %c0_i32_1 = arith.constant 0 : i32
    return %c0_i32, %c0_i32_0 : i32, i32
  }
  func.func @transform_6(%arg0: i32) -> (i32, i32) {
    %c0_i32 = arith.constant 0 : i32
    %c0_i32_0 = arith.constant 0 : i32
    %c0_i32_1 = arith.constant 0 : i32
    return %c0_i32, %c0_i32_0 : i32, i32
  }
  func.func @transform_7(%arg0: i32) -> (i32, i32) {
    %c0_i32 = arith.constant 0 : i32
    %c0_i32_0 = arith.constant 0 : i32
    %c0_i32_1 = arith.constant 0 : i32
    return %c0_i32, %c0_i32_0 : i32, i32
  }
  func.func @transform_8(%arg0: i32) -> (i32, i32, i32, i32) {
    %c0_i32 = arith.constant 0 : i32
    %c0_i32_0 = arith.constant 0 : i32
    %c0_i32_1 = arith.constant 0 : i32
    %c0_i32_2 = arith.constant 0 : i32
    return %arg0, %c0_i32, %c0_i32_0, %c0_i32_1 : i32, i32, i32, i32
  }
}

</mosaic_0001>

<bundles_post_ra>
// kernel: tpu_custom_call.1
= control target key start
LH: loop header
LB: loop body
LE: loop exit
PB: predicated region body
PF: predicated region fallthrough
CT: control target
= control target key end

     0   :  { %13 = vsyncpa [#allocation4], 0  ;;  %s1899_s0 = inlined_call_operand.vmem [shape: bf16[2,18,64], index: 0, kind: input, shape index: {}]   ;;  %s1900_s1 = inlined_call_operand.hbm [shape: bf16[3,64,64], index: 1, kind: input, shape index: {}]   ;;  %s1901_s2 = inlined_call_operand.vmem [shape: f32[1,64], index: 2, kind: input, shape index: {}]   ;;  %s1902_s3 = inlined_call_operand.hbm [shape: bf16[3,64,64], index: 3, kind: input, shape index: {}]   ;;  %s1903_s4 = inlined_call_operand.vmem [shape: f32[1,64], index: 4, kind: input, shape index: {}]   ;;  %s1904_s5 = inlined_call_operand.vmem [shape: bf16[64,128], index: 5, kind: input, shape index: {}]   ;;  %s1905_s6 = inlined_call_operand.hbm [shape: bf16[64,128], index: 6, kind: input, shape index: {}]   ;;  %s1906_s7 = inlined_call_operand.vmem [shape: f32[1,128], index: 7, kind: input, shape index: {}]   ;;  %s1907_s8 = inlined_call_operand.hbm [shape: f32[2,2,16,128], index: 8, kind: output, shape index: {}]  }
   0x1   :  { %14 = vsyncpa [#allocation7], 0 }
   0x2   :  { %15 = vsyncpa [#allocation5], 0 }
   0x3   :  { %17 = vsyncpa [#allocation5 + $0x1], 0  ;;  %s1667_s27 = smov 0   ;;  %s1669_s28 = smov 0  }
   0x4   :  { %s1671_s29 = smov 0   ;;  %s1673_s30 = smov 0  }
   0x5 LB: > { %s1688_s9 = sadd.s32 4294967295, %s1610_s30   ;;  %s1150_s10 = sadd.s32 4294967294, %s1610_s30   ;;  %s1610_s30 = sphi %s1673_s30, %s1923_s30   ;;  %s1606_s29 = sphi %s1671_s29, %s1922_s29   ;;  %s1602_s28 = sphi %s1669_s28, %s1921_s28   ;;  %s1598_s27 = sphi %s1667_s27, %s1920_s27  }
   0x6   : > { %s1692_s11 = sadd.s32 1, %s1610_s30   ;;  %s203_s12 = sadd.s32 1, %s1606_s29 }
   0x7   : > { %s200_s13 = ssub.s32 %s1610_s30, %s1692_s11  ;;  %p213_p0 = scmp.ne.s32.totalorder %s1606_s29, %s1602_s28 }
   0x8   : > { %p201_p1 = scmp.eq.s32.totalorder %s200_s13, 0  ;;  %p214_p2 = scmp.eq.s32.totalorder %s1688_s9, 1 }
   0x9   : > { %p219_p3 = scmp.ne.s32.totalorder %s1602_s28, %s1598_s27  ;;  %p220_p4 = scmp.eq.s32.totalorder %s1150_s10, 1 }
   0xa   : > { %s1703_s14 = scalar_select %p201_p1, %s1606_s29, %s203_s12  }
   0xb   : > { %p1705_p5 = por %p214_p2, %p213_p0  ;;  %p1709_p6 = por %p220_p4, %p219_p3 }
   0xc   : > { %p1151_p7 = scmp.ge.s32.totalorder %s1610_s30, 1  ;;  %p227_p8 = scmp.lt.s32.totalorder %s1610_s30, 3 }
   0xd   : > { %s1910_s15 = scalar_select %p1705_p5, 1, 0 }
   0xe   : > { %s1911_s16 = scalar_select %p1709_p6, 1, 0 }
   0xf   : > { %p1908_p9 = scmp.eq.s32.totalorder %s1688_s9, 0  ;;  %p1716_p10 = pnand %p1151_p7, %p227_p8 }
  0x10   : > { %s1612_s18 = smov [#allocation6]   ;;  %s1613_s21 = smov [#allocation3]  }
  0x11   : > { %p1367_p11 = pneg %p1716_p10  ;;  %s255_s19 = sshll.u32 %s1612_s18, 4  ;;  %s256_s19 = int_to_ptr.vmem [resolvable:$true] %s255_s19 }
  0x12   : > { %s239_s22 = sshll.u32 %s1613_s21, 4  ;;  %s1614_s23 = smov [#allocation8]   ;;  %s240_s22 = int_to_ptr.vmem [resolvable:$true] %s239_s22 }
  0x13   : > { %p1724_p12 = pnand %p1908_p9, %p1367_p11  ;;  %s274_s24 = sshll.u32 %s1614_s23, 4  ;;  %s275_s24 = int_to_ptr.vmem [resolvable:$true] %s274_s24 }
  0x14   : > { %s1475_s25 = scalar_lea.vmem %s256_s19, 1536  ;;  %p1483_p3 = scmp.lt.s32.totalorder %s256_s19, %s256_s19 }
  0x15   : > { %p1466_p13 = pneg %p1724_p12  ;;  %p1476_p0 = scmp.ne.s32.totalorder %s256_s19, %s1475_s25 }
  0x16   : > { %p1484_p4 = scmp.lt.s32.totalorder %s1475_s25, %s1475_s25 }
  0x17   : > { %p1478_p1 = pnand %p1476_p0, %p1466_p13 }
  0x18   : > { %p1485_p7 = por %p1484_p4, %p1483_p3 }
  0x19   : > { %p1479_p2 = pneg %p1478_p1 }
  0x1b   : > { %p1486_p8 = pnand %p1485_p7, %p1479_p2 }
  0x1d   : > { %1489 = shalt.err (!%p1486_p8)
}
  0x1e   : > { %s1615_s26 = smov 64   ;;  %s1616_s10 = smov 4  }
  0x1f   : > { %1373 = dma.hbm_to_vmem [thread:$0]  (!%p1724_p12), %s1902_s3, 1536, %s256_s19, [#allocation7], %s1615_s26, %s1615_s26, %s1616_s10  }
  0x20   : > { %s1501_s18 = scalar_lea.vmem %s240_s22, 1536  ;;  %p1509_p9 = scmp.lt.s32.totalorder %s240_s22, %s240_s22 }
  0x21   : > { %p1502_p11 = scmp.ne.s32.totalorder %s240_s22, %s1501_s18  ;;  %p1510_p6 = scmp.lt.s32.totalorder %s1501_s18, %s1501_s18 }
  0x23   : > { %p1504_p0 = pnand %p1502_p11, %p1466_p13  ;;  %p1511_p3 = por %p1510_p6, %p1509_p9 }
  0x25   : > { %p1505_p1 = pneg %p1504_p0 }
  0x27   : > { %p1512_p2 = pnand %p1511_p3, %p1505_p1 }
  0x29   : > { %1515 = shalt.err (!%p1512_p2)
}
  0x2a   : > { %1370 = dma.hbm_to_vmem [thread:$0]  (!%p1724_p12), %s1900_s1, 1536, %s240_s22, [#allocation4], %s1615_s26, %s1615_s26, %s1616_s10  }
  0x2b   : > { %s1527_s19 = scalar_lea.vmem %s275_s24, 512  ;;  %p1535_p11 = scmp.lt.s32.totalorder %s275_s24, %s275_s24 }
  0x2c   : > { %p1528_p4 = scmp.ne.s32.totalorder %s275_s24, %s1527_s19  ;;  %p1536_p0 = scmp.lt.s32.totalorder %s1527_s19, %s1527_s19 }
  0x2e   : > { %p1530_p7 = pnand %p1528_p4, %p1466_p13  ;;  %p1537_p5 = por %p1536_p0, %p1535_p11 }
  0x30   : > { %p1531_p8 = pneg %p1530_p7 }
  0x32   : > { %p1538_p6 = pnand %p1537_p5, %p1531_p8 }
  0x34   : > { %1541 = shalt.err (!%p1538_p6)
}
  0x35   : > { %1376 = dma.hbm_to_vmem [thread:$0]  (!%p1724_p12), %s1905_s6, 512, %s275_s24, [#allocation7], %s1615_s26, %s1615_s26, %s1616_s10  }
  0x36   : > { %301 = sbr.rel (%p1716_p10) target bundleno = 744 (0x2e8), region = 52  ;;  %p1914_p9 = scmp.eq.s32.totalorder (!%p1716_p10), %s1688_s9, 0 }
  0x3b   : > { %1585 = dma.done.wait (%p1914_p9), [#allocation4], 1536   ;;  %p1915_p13 = pmov %p1914_p9 }
  0x3c   : > { %p1916_p1 = pmov %p1914_p9 }
  0x3d   : > { %1587 = vsyncadd (%p1915_p13), [#allocation4], 4294965760 }
  0x3e   : > { %1589 = dma.done.wait (%p1916_p1), [#allocation7], 2048   ;;  %p1917_p5 = pmov %p1916_p1 }
  0x3f   : > { %p343_p3 = scmp.lt.s32.totalorder %s1688_s9, 1  ;;  %v1617_v0 = vmov 0.0   ;;  %vm1618_vm0 = vmmov 0   ;;  %v1429_v1 = vld [vmem:[#allocation3 + $0x38] sm:$0xff]   ;;  %v1431_v3 = vld [vmem:[#allocation3 + $0x30] sm:$0xff]   ;;  %v1433_v5 = vld [vmem:[#allocation3 + $0x28] sm:$0xff]  }
  0x40   : > { %1591 = vsyncadd (%p1917_p5), [#allocation7], 4294965248  ;;  %1256 = vmatprep.subr.bf16.mxu0 %v1617_v0  ;;  %1268 = vmatprep.subr.bf16.mxu1 %v1617_v0  ;;  %v1430_v2 = vld [vmem:[#allocation3 + $0x18] sm:$0xff]   ;;  %v1432_v4 = vld [vmem:[#allocation3 + $0x10] sm:$0xff]   ;;  %vm377_vm1 = vsmask.f32 7424 }
  0x41   : > { %1264 = vmatprep.mubr.msk.bf16.mxu0 %vm1618_vm0, %v1617_v0  ;;  %1276 = vmatprep.mubr.msk.bf16.mxu1 %vm1618_vm0, %v1617_v0  ;;  %s344_s17 = scalar_select %p343_p3, %s1688_s9, 1  ;;  %v1434_v6 = vld [vmem:[#allocation3 + $0x8] sm:$0xff]   ;;  %v1435_v9 = vld [vmem:[#allocation3 + $0x20] sm:$0xff]   ;;  %vm414_vm2 = vcmask 523264   ;;  %v1439_v18 = vld [vmem:[#allocation3 + $0x58] sm:$0xff]   ;;  %vm539_vm3 = vcmask 1046528  }
  0x42   : > { %1257 = vmatpush3.bf16.msra.mxu0 %v1429_v1  ;;  %1269 = vmatpush3.bf16.msra.mxu1 %v1430_v2  ;;  %v1436_v12 = vld [vmem:[#allocation3] sm:$0xff]   ;;  %v1440_v23 = vld [vmem:[#allocation3 + $0x50] sm:$0xff]   ;;  %v1441_v26 = vld [vmem:[#allocation3 + $0x48] sm:$0xff]   ;;  %vm624_vm4 = vcmask 516096   ;;  %s1215_s19 = sshll.u32 %s1688_s9, 9  ;;  %p1918_p12 = scmp.ne.s32.totalorder %s1910_s15, 0 }
  0x43   : > { %s1352_s20 = smul.u32 12, %s344_s17  ;;  %1258 = vmatprep.subr.bf16.mxu0 %v1617_v0  ;;  %1270 = vmatprep.subr.bf16.mxu1 %v1617_v0  ;;  %v1442_v27 = vld [vmem:[#allocation3 + $0x40] sm:$0xff]   ;;  %v1444_v29 = vld [vmem:[#allocation6 + $0x38] sm:$0xff]   ;;  %v1446_v31 = vld [vmem:[#allocation6 + $0x30] sm:$0xff]   ;;  %625 = vst.msk [vmem:[#allocation2] sm:$0x1] %vm624_vm4, %v1617_v0  ;;  %s1857_s17 = scalar_lea.hbm %s1907_s8, %s1215_s19 }
  0x44   : > { %v1445_v30 = vld [vmem:[#allocation6 + $0x18] sm:$0xff]   ;;  %626 = vst.msk [vmem:[#allocation2 + $0x11] sm:$0x1] %vm624_vm4, %v1617_v0  ;;  %v1447_v32 = vld [vmem:[#allocation6 + $0x10] sm:$0xff]   ;;  %v1448_v33 = vld [vmem:[#allocation6 + $0x28] sm:$0xff]   ;;  %s1619_s22 = smov [#allocation9]  }
  0x45   : > { %s347_s26 = scalar_lea.vmem %s1899_s0, %s1352_s20  ;;  %v1449_v34 = vld [vmem:[#allocation6 + $0x8] sm:$0xff]   ;;  %v1450_v35 = vld [vmem:[#allocation6 + $0x20] sm:$0xff]   ;;  %v1452_v59 = vld [vmem:[#allocation6 + $0x58] sm:$0xff]   ;;  %s1546_s24 = sshll.u32 %s1619_s22, 4  ;;  %s1547_s24 = int_to_ptr.vmem [resolvable:$false] %s1546_s24 }
  0x46   : > { %1259 = vmatpush3.bf16.msra.mxu0 %v1431_v3  ;;  %1271 = vmatpush3.bf16.msra.mxu1 %v1432_v4  ;;  %v349_v7 = vld [vmem:[%s347_s26] sm:$0xf]  ;;  %v350_v8 = vld [vmem:[%s347_s26 + $0x4] sm:$0xf]  ;;  %v1451_v36 = vld [vmem:[#allocation6] sm:$0xff]  }
  0x47   : > { %1260 = vmatprep.subr.bf16.mxu0 %v1617_v0  ;;  %1272 = vmatprep.subr.bf16.mxu1 %v1617_v0  ;;  %v1162_v10 = vcombine.low %v349_v7, %v350_v8  ;;  %v1438_v11 = vld [vmem:[%s347_s26 + $0x8] ss:$0 sps:$4 sm:$0x11]   ;;  %v526_v19 = vld [vmem:[%s347_s26] sm:$0xe]  ;;  %v1455_v4 = vld [vmem:[#allocation6 + $0x40] sm:$0xff]  }
  0x48   : > { %v386_v15 = vshll.u32 %v1438_v11, 16  ;;  %v1174_v21 = vcombine.low %v526_v19, %v350_v8  ;;  %v541_v25 = vrot.slane %v1438_v11, 1  ;;  %v1180_v47 = vld [vmem:[%s1901_s2] ss:$0 sm:$0xff]  ;;  %v1453_v2 = vld [vmem:[#allocation6 + $0x50] sm:$0xff]   ;;  %v1456_v8 = vld [vmem:[%s1904_s5 + $0x18] sm:$0xff]  }
  0x49   : > { %v379_v13 = vshrl.u32 %v1162_v10, 16  ;;  %v381_v14 = vshll.u32 %v1162_v10, 16  ;;  %v1454_v3 = vld [vmem:[#allocation6 + $0x48] sm:$0xff]   ;;  %v1459_v11 = vld [vmem:[#allocation8 + $0x10] sm:$0xff]   ;;  %s340_s26 = sand.u32 1, %s1602_s28  }
  0x4a   : > { %1261 = vmatpush3.bf16.msra.mxu0 %v1433_v5  ;;  %1273 = vmatpush3.bf16.msra.mxu1 %v1434_v6  ;;  %v388_v17 = vrot.slane %v386_v15, 1  ;;  %v540_v24 = vrot.slane %v1174_v21, 1  ;;  %v1463_v15 = vld [vmem:[#allocation8] sm:$0xff]   ;;  %s1160_s10 = sshll.u32 %s340_s26, 5  ;;  %s1859_s9 = scalar_lea.sflag [#allocation5], %s340_s26 }
  0x4b   : > { %1262 = vmatprep.subr.bf16.mxu0 %v1617_v0  ;;  %1274 = vmatprep.subr.bf16.mxu1 %v1617_v0  ;;  %v383_v16 = vrot.slane %v381_v14, 1  ;;  %v1462_v14 = vld [vmem:[%s1904_s5] sm:$0xff]   ;;  %s342_s21 = scalar_lea.vmem [#allocation9], %s1160_s10  ;;  %s1548_s10 = scalar_lea.vmem %s1547_s24, 1024 }
  0x4c   : > { %v542_v28 = vsel %vm539_vm3, %v540_v24, %v541_v25  ;;  %s1057_s23 = sshll.u32 %s342_s21, 4  ;;  %s1852_s23 = int_to_ptr.vmem [resolvable:$true] %s1057_s23 }
  0x4d   : > { %v384_v20 = vor.u32 %v383_v16, %v379_v13  ;;  %v1461_v13 = vld [vmem:[#allocation8 + $0x8] sm:$0xff]   ;;  %s1542_s20 = scalar_lea.vmem %s1852_s23, 512  ;;  %p1549_p7 = scmp.lt.s32.totalorder %s1852_s23, %s1547_s24 }
  0x4e   : > { %1263 = vmatpush3.bf16.msra.mxu0 %v1435_v9  ;;  %1275 = vmatpush3.bf16.msra.mxu1 %v1436_v12  ;;  %v1457_v9 = vld [vmem:[#allocation8 + $0x18] sm:$0xff]   ;;  %v1460_v12 = vld [vmem:[%s1904_s5 + $0x8] sm:$0xff]   ;;  %p1543_p10 = scmp.ne.s32.totalorder %s1852_s23, %s1542_s20  ;;  %p1550_p8 = scmp.lt.s32.totalorder %s1548_s10, %s1542_s20 }
  0x4f   : > { %1280 = vmatprep.subr.bf16.mxu0 %v1617_v0  ;;  %1292 = vmatprep.subr.bf16.mxu1 %v1617_v0  ;;  %v389_v22 = vsel %vm377_vm1, %v384_v20, %v388_v17 }
  0x50   : > { %p1544_p2 = pnand %p1543_p10, %p1918_p12  ;;  %p1551_p11 = por %p1550_p8, %p1549_p7 }
  0x51   : > { %1265 = vmatmul.mubr.msk.bf16.vlgmr.msra.gmra.mxu0 %vm414_vm2, %v389_v22  ;;  %1277 = vmatmul.mubr.msk.bf16.vlgmr.msra.gmra.mxu1 %vm414_vm2, %v1162_v10  ;;  %v1458_v10 = vld [vmem:[%s1904_s5 + $0x10] sm:$0xff]  }
  0x52   : > { %1281 = vmatpush3.bf16.msra.mxu0 %v1439_v18  ;;  %1288 = vmatprep.mubr.msk.bf16.mxu0 %vm1618_vm0, %v1617_v0  ;;  %p1545_p4 = pneg %p1544_p2 }
  0x53   : > { %1282 = vmatprep.subr.bf16.mxu0 %v1617_v0  ;;  %1300 = vmatprep.mubr.msk.bf16.mxu1 %vm1618_vm0, %v1617_v0 }
  0x54   : > { %1293 = vmatpush3.bf16.msra.mxu1 %v1444_v29  ;;  %p1552_p0 = pnand %p1551_p11, %p1545_p4 }
  0x55   : > { %1294 = vmatprep.subr.bf16.mxu1 %v1617_v0 }
  0x56   : > { %1283 = vmatpush3.bf16.msra.mxu0 %v1440_v23 }
  0x57   : > { %1284 = vmatprep.subr.bf16.mxu0 %v1617_v0 }
  0x58   : > { %1295 = vmatpush3.bf16.msra.mxu1 %v1446_v31 }
  0x59   : > { %1296 = vmatprep.subr.bf16.mxu1 %v1617_v0 }
  0x5a   : > { %1285 = vmatpush3.bf16.msra.mxu0 %v1441_v26 }
  0x5b   : > { %1286 = vmatprep.subr.bf16.mxu0 %v1617_v0 }
  0x5c   : > { %1297 = vmatpush3.bf16.msra.mxu1 %v1448_v33 }
  0x5d   : > { %1298 = vmatprep.subr.bf16.mxu1 %v1617_v0 }
  0x5e   : > { %1287 = vmatpush3.bf16.msra.mxu0 %v1442_v27 }
  0x5f   : > { %1304 = vmatprep.subr.bf16.mxu0 %v1617_v0 }
  0x60   : > { %1299 = vmatpush3.bf16.msra.mxu1 %v1450_v35 }
  0x61   : > { %1289 = vmatmul.mubr.msk.bf16.vlgmr.msra.gmra.mxu0 %vm414_vm2, %v542_v28  ;;  %1316 = vmatprep.subr.bf16.mxu1 %v1617_v0 }
  0x62   : > { %1312 = vmatprep.mubr.msk.bf16.mxu0 %vm1618_vm0, %v1617_v0  ;;  %1305 = vmatpush3.bf16.msra.mxu0 %v1445_v30 }
  0x63   : > { %1306 = vmatprep.subr.bf16.mxu0 %v1617_v0 }
  0x66   : > { %1307 = vmatpush3.bf16.msra.mxu0 %v1447_v32 }
  0x67   : > { %1308 = vmatprep.subr.bf16.mxu0 %v1617_v0 }
  0x6a   : > { %1309 = vmatpush3.bf16.msra.mxu0 %v1449_v34 }
  0x6b   : > { %1310 = vmatprep.subr.bf16.mxu0 %v1617_v0 }
  0x6e   : > { %1311 = vmatpush3.bf16.msra.mxu0 %v1451_v36 }
  0x6f   : > { %1328 = vmatprep.subr.bf16.mxu0 %v1617_v0 }
 0x111   : > { %v452_v37 = vpop.f32.mrf.mxu0  ;;  %v519_v38 = vpop.f32.mrf.mxu1 }
 0x112   : > { %v520_v45 = vadd.f32 %v519_v38, %v452_v37  ;;  %v1197_v37 = vld [vmem:[%s1906_s7] ss:$0 sm:$0xff] }
 0x113   : > { %v1266_v39 = vpop.f32.mrf.mxu0  ;;  %v1278_v40 = vpop.f32.mrf.mxu1 }
 0x115   : > { %v455_v41 = vpop.f32.mrf.mxu0  ;;  %v522_v42 = vpop.f32.mrf.mxu1 }
 0x116   : > { %v523_v50 = vadd.f32 %v522_v42, %v455_v41 }
 0x117   : > { %v1267_v43 = vpop.f32.mrf.mxu0  ;;  %v1279_v44 = vpop.f32.mrf.mxu1 }
 0x121   : > { %v604_v46 = vpop.f32.mrf.mxu0 }
 0x122   : > { %v611_v48 = vadd.f32 %v604_v46, %v520_v45 }
 0x123   : > { %v1290_v49 = vpop.f32.mrf.mxu0 }
 0x124   : > { %v620_v51 = vadd.f32 %v1180_v47, %v611_v48 }
 0x125   : > { %v607_v52 = vpop.f32.mrf.mxu0 }
 0x126   : > { %v622_v53 = vmax.f32 %v620_v51, 0.0  ;;  %v612_v54 = vadd.f32 %v607_v52, %v523_v50 }
 0x127   : > { %v1291_v55 = vpop.f32.mrf.mxu0 }
 0x128   : > { %627 = vst.msk [vmem:[#allocation2 + $0x1] sm:$0xff] %vm414_vm2, %v622_v53  ;;  %v621_v56 = vadd.f32 %v1180_v47, %v612_v54 }
 0x12a   : > { %v623_v57 = vmax.f32 %v621_v56, 0.0 }
 0x12c   : > { %628 = vst.msk [vmem:[#allocation2 + $0x9] sm:$0xff] %vm414_vm2, %v623_v57 }
 0x12f   : > { %v640_v58 = vld [vmem:[#allocation2 + $0x1] sm:$0xff] }
 0x130   : > { %v629_v61 = vld [vmem:[#allocation2] sm:$0xff] }
 0x133   : > { %v641_v60 = vld [vmem:[#allocation2 + $0x9] sm:$0xff] }
 0x134   : > { %v630_v62 = vld [vmem:[#allocation2 + $0x8] sm:$0xff]  ;;  %v642_v63 = vpack.c.bf16 %v641_v60, %v640_v58 }
 0x135   : > { %v631_v1 = vpack.c.bf16 %v630_v62, %v629_v61  ;;  %v788_v5 = vld [vmem:[#allocation2 + $0x2] sm:$0xff]  ;;  %v789_v6 = vld [vmem:[#allocation2 + $0xa] sm:$0xff] }
 0x136   : > { %1301 = vmatmul.mubr.msk.bf16.vlgmr.msra.gmra.mxu1 %vm414_vm2, %v642_v63  ;;  %v790_v7 = vpack.c.bf16 %v789_v6, %v788_v5 }
 0x137   : > { %1313 = vmatmul.mubr.msk.bf16.vlgmr.msra.gmra.mxu0 %vm414_vm2, %v631_v1  ;;  %1317 = vmatpush3.bf16.msra.mxu1 %v1452_v59 }
 0x138   : > { %1324 = vmatprep.mubr.msk.bf16.mxu1 %vm1618_vm0, %v1617_v0  ;;  %1318 = vmatprep.subr.bf16.mxu1 %v1617_v0 }
 0x139   : > { %1336 = vmatprep.mubr.msk.bf16.mxu0 %vm1618_vm0, %v1617_v0  ;;  %1329 = vmatpush3.bf16.msra.mxu0 %v1456_v8 }
 0x13a   : > { %1330 = vmatprep.subr.bf16.mxu0 %v1617_v0 }
 0x13b   : > { %1319 = vmatpush3.bf16.msra.mxu1 %v1453_v2 }
 0x13c   : > { %1320 = vmatprep.subr.bf16.mxu1 %v1617_v0 }
 0x13d   : > { %1331 = vmatpush3.bf16.msra.mxu0 %v1458_v10 }
 0x13e   : > { %1332 = vmatprep.subr.bf16.mxu0 %v1617_v0 }
 0x13f   : > { %1321 = vmatpush3.bf16.msra.mxu1 %v1454_v3 }
 0x140   : > { %1322 = vmatprep.subr.bf16.mxu1 %v1617_v0 }
 0x141   : > { %1333 = vmatpush3.bf16.msra.mxu0 %v1460_v12 }
 0x142   : > { %1334 = vmatprep.subr.bf16.mxu0 %v1617_v0 }
 0x143   : > { %1323 = vmatpush3.bf16.msra.mxu1 %v1455_v4 }
 0x144   : > { %1340 = vmatprep.subr.bf16.mxu1 %v1617_v0 }
 0x145   : > { %1335 = vmatpush3.bf16.msra.mxu0 %v1462_v14 }
 0x146   : > { %1325 = vmatmul.mubr.msk.bf16.vlgmr.msra.gmra.mxu1 %vm414_vm2, %v790_v7 }
 0x147   : > { %1348 = vmatprep.mubr.msk.bf16.mxu1 %vm1618_vm0, %v1617_v0  ;;  %1341 = vmatpush3.bf16.msra.mxu1 %v1457_v9 }
 0x148   : > { %1342 = vmatprep.subr.bf16.mxu1 %v1617_v0 }
 0x14b   : > { %1343 = vmatpush3.bf16.msra.mxu1 %v1459_v11 }
 0x14c   : > { %1344 = vmatprep.subr.bf16.mxu1 %v1617_v0 }
 0x14f   : > { %1345 = vmatpush3.bf16.msra.mxu1 %v1461_v13 }
 0x150   : > { %1346 = vmatprep.subr.bf16.mxu1 %v1617_v0  ;;  %v1196_v0 = vld [vmem:[%s1903_s4] ss:$0 sm:$0xff] }
 0x153   : > { %1347 = vmatpush3.bf16.msra.mxu1 %v1463_v15 }
 0x1f6   : > { %v713_v16 = vpop.f32.mrf.mxu1 }
 0x1f7   : > { %v781_v17 = vpop.f32.mrf.mxu0 }
 0x1f8   : > { %v1302_v18 = vpop.f32.mrf.mxu1  ;;  %v782_v24 = vadd.f32 %v781_v17, %v713_v16 }
 0x1f9   : > { %v1314_v19 = vpop.f32.mrf.mxu0 }
 0x1fa   : > { %v716_v20 = vpop.f32.mrf.mxu1 }
 0x1fb   : > { %v784_v21 = vpop.f32.mrf.mxu0 }
 0x1fc   : > { %v1303_v22 = vpop.f32.mrf.mxu1  ;;  %v785_v28 = vadd.f32 %v784_v21, %v716_v20 }
 0x1fd   : > { %v1315_v23 = vpop.f32.mrf.mxu0 }
 0x206   : > { %v861_v25 = vpop.f32.mrf.mxu1 }
 0x207   : > { %v868_v26 = vadd.f32 %v861_v25, %v782_v24 }
 0x208   : > { %v1326_v27 = vpop.f32.mrf.mxu1 }
 0x209   : > { %v877_v30 = vadd.f32 %v1196_v0, %v868_v26 }
 0x20a   : > { %v864_v29 = vpop.f32.mrf.mxu1 }
 0x20b   : > { %v869_v31 = vadd.f32 %v864_v29, %v785_v28  ;;  %v879_v34 = vmax.f32 %v877_v30, 0.0 }
 0x20c   : > { %v1327_v32 = vpop.f32.mrf.mxu1 }
 0x20d   : > { %v878_v33 = vadd.f32 %v1196_v0, %v869_v31 }
 0x20f   : > { %v880_v35 = vmax.f32 %v878_v33, 0.0 }
 0x211   : > { %v881_v36 = vpack.c.bf16 %v880_v35, %v879_v34 }
 0x213   : > { %1337 = vmatmul.mubr.msk.bf16.vlgmr.msra.gmra.mxu0 %vm414_vm2, %v881_v36  ;;  %1349 = vmatmul.mubr.msk.bf16.vlgmr.msra.gmra.mxu1 %vm414_vm2, %v881_v36 }
 0x2d3   : > { %v958_v38 = vpop.f32.mrf.mxu0  ;;  %v1031_v39 = vpop.f32.mrf.mxu1 }
 0x2d4   : > { %v959_v40 = vadd.f32 %v1197_v37, %v958_v38  ;;  %v1032_v41 = vadd.f32 %v1197_v37, %v1031_v39 }
 0x2d5   : > { %v1338_v42 = vpop.f32.mrf.mxu0  ;;  %v1350_v43 = vpop.f32.mrf.mxu1 }
 0x2d6   : > { %1038 = vst [vmem:[%s342_s21] sm:$0xff] %v959_v40  ;;  %1208 = vst [vmem:[%s342_s21 + $0x10] sm:$0xff] %v1032_v41 }
 0x2d7   : > { %v961_v44 = vpop.f32.mrf.mxu0  ;;  %v1034_v45 = vpop.f32.mrf.mxu1 }
 0x2d8   : > { %v962_v46 = vadd.f32 %v1197_v37, %v961_v44  ;;  %v1035_v47 = vadd.f32 %v1197_v37, %v1034_v45 }
 0x2d9   : > { %v1339_v48 = vpop.f32.mrf.mxu0  ;;  %v1351_v49 = vpop.f32.mrf.mxu1 }
 0x2da   : > { %1039 = vst [vmem:[%s342_s21 + $0x8] sm:$0xff] %v962_v46  ;;  %1209 = vst [vmem:[%s342_s21 + $0x18] sm:$0xff] %v1035_v47 }
 0x2db   : > { %1555 = shalt.err (!%p1552_p0)
}
 0x2dc   : > { %s1556_s26 = scalar_lea.hbm %s1857_s17, 512  ;;  %s1560_s21 = scalar_lea.hbm %s1907_s8, 1024 }
 0x2dd   : > { %p1557_p6 = scmp.ne.s32.totalorder %s1857_s17, %s1556_s26  ;;  %p1561_p1 = scmp.lt.s32.totalorder %s1857_s17, %s1907_s8 }
 0x2de   : > { %p1562_p5 = scmp.lt.s32.totalorder %s1560_s21, %s1556_s26 }
 0x2df   : > { %p1558_p9 = pnand %p1557_p6, %p1918_p12 }
 0x2e0   : > { %p1563_p3 = por %p1562_p5, %p1561_p1 }
 0x2e1   : > { %p1559_p13 = pneg %p1558_p9 }
 0x2e3   : > { %p1564_p10 = pnand %p1563_p3, %p1559_p13 }
 0x2e5   : > { %1567 = shalt.err (!%p1564_p10)
}
 0x2e6   : > { %s1620_s12 = smov 128   ;;  %s1621_s20 = smov 8  }
 0x2e7   : > { %1365 = dma.vmem_to_hbm [thread:$0]  (%p1918_p12), %s1852_s23, 512, %s1857_s17, %s1859_s9, %s1620_s12, %s1620_s12, %s1621_s20  }
 0x2e8 PF: > { %p1387_p2 = scmp.ge.s32.totalorder %s1610_s30, 2  ;;  %s1072_s22 = sand.u32 1, %s1598_s27  }
 0x2e9   : > { %p1919_p4 = scmp.ne.s32.totalorder %s1911_s16, 0  ;;  %s1073_s24 = scalar_lea.sflag [#allocation5], %s1072_s22 }
 0x2eb   : > { %p1378_p7 = pnand %p1387_p2, %p1919_p4 }
 0x2ed   : > { %p1379_p8 = pneg %p1378_p7 }
 0x2ef   : > { %1593 = dma.done.wait (%p1379_p8), %s1073_s24, 512  }
 0x2f0   : > { %1595 = vsyncadd (%p1379_p8), %s1073_s24, 4294966784  ;;  %p20_p11 = scmp.ge.s32.totalorder %s1692_s11, 4   ;;  %s1920_s27 = smov %s1602_s28 }
 0x2f1   : > { %s1921_s28 = smov %s1606_s29  ;;  %s1922_s29 = smov %s1703_s14 }
 0x2f2   : > { %s1923_s30 = smov %s1692_s11  ;;  %22 = sbr.rel (!%p20_p11) target bundleno = 5 (0x5), region = 105 }
 0x2f7   :  { %1078 = vsyncpa [#allocation4], 1 }
 0x2f8   :  { %1080 = vsyncpa [#allocation4 + $0x1], 1 }
 0x2f9   :  { %1081 = vsyncpa [#allocation7], 1 }
 0x2fa   :  { %1082 = vsyncpa [#allocation5], 1 }
 0x2fb   :  { %1084 = vsyncpa [#allocation5 + $0x1], 1 }

</bundles_post_ra>
